<compile_context>
chip_gen: v6e
topology: v6e:2x2x1
jax: 0.10.0
libtpu: 0.0.40
codegen_flags: <defaults>
</compile_context>

<pallas_src>
import jax
import jax.numpy as jnp
from jax.experimental import pallas as pl
from jax.experimental.pallas import tpu as pltpu


_FULL_K_LIMIT = 8192   # dim_in up to this stays un-tiled on K (fits VMEM in bf16)
_TK = 512              # K tile for the (rare) huge-dim_in path


def _round_up(v, m):
    return (v + m - 1) // m * m


def _pick_m_tile(m):
    if m <= 128:
        return m            # single (full-extent) block
    if m >= 4096:
        return 512
    if m >= 1024:
        return 256
    return 128               # >=2 M blocks for GNN-sized batches -> megacore split


def _pick_n_tile(n):
    if n <= 256:
        return n             # full extent (typical GNN dim_out)
    if n >= 4096:
        return 512
    return 256


def _vmem_limit(*block_bytes):
    # Double-buffered blocks + generous headroom, clamped for v7x (64 MiB phys).
    need = 2 * sum(block_bytes)
    return int(min(max(3 * need, 16 * 1024 * 1024), 48 * 1024 * 1024))


def _linear_fullk_kernel(x_ref, w_ref, o_ref):
    # x_ref: [TM, K] bf16, w_ref: [TN, K] bf16 (PyTorch [out, in] layout).
    # Contracting both last dims == x @ W.T, f32 accumulation on the MXU.
    o_ref[...] = jax.lax.dot_general(
        x_ref[...], w_ref[...],
        dimension_numbers=(((1,), (1,)), ((), ())),
        preferred_element_type=jnp.float32,
    ).astype(o_ref.dtype)


def _linear_ktiled_kernel(x_ref, w_ref, o_ref):
    # Output block is resident across the innermost ("arbitrary") K axis, so
    # accumulate straight into the f32 output -- no scratch, no final copy.
    @pl.when(pl.program_id(2) == 0)
    def _():
        o_ref[...] = jnp.zeros_like(o_ref)

    o_ref[...] += jax.lax.dot_general(
        x_ref[...], w_ref[...],
        dimension_numbers=(((1,), (1,)), ((), ())),
        preferred_element_type=jnp.float32,
    )


@jax.jit
def linear_forward(x, weight):
    """y = x @ weight.T  (PyTorch nn.Linear layout: weight is [dim_out, dim_in])."""
    *lead, dim_in = x.shape
    dim_out = weight.shape[0]
    m = 1
    for d in lead:
        m *= d

    # bf16 operands, f32 accumulation/output (cast back to input dtype at end).
    x2 = x.reshape(m, dim_in).astype(jnp.bfloat16)
    w = weight.astype(jnp.bfloat16)          # stays [dim_out, dim_in]; no transpose

    tm = _pick_m_tile(m)
    tn = _pick_n_tile(dim_out)

    if dim_in <= _FULL_K_LIMIT:
        # Fast path: single K block (full array extent), 2-D grid, no padding.
        grid = (pl.cdiv(m, tm), pl.cdiv(dim_out, tn))
        out = pl.pallas_call(
            _linear_fullk_kernel,
            out_shape=jax.ShapeDtypeStruct((m, dim_out), jnp.float32),
            grid_spec=pltpu.PrefetchScalarGridSpec(
                num_scalar_prefetch=0,
                grid=grid,
                in_specs=[
                    pl.BlockSpec((tm, dim_in), lambda i, j: (i, 0)),
                    pl.BlockSpec((tn, dim_in), lambda i, j: (j, 0)),
                ],
                out_specs=pl.BlockSpec((tm, tn), lambda i, j: (i, j)),
            ),
            compiler_params=pltpu.CompilerParams(
                dimension_semantics=("parallel", "parallel"),
                vmem_limit_bytes=_vmem_limit(
                    tm * dim_in * 2, tn * dim_in * 2, tm * tn * 4),
            ),
        )(x2, w)
    else:
        # Huge dim_in: tile K. Only the contraction dim is zero-padded (needed
        # for correctness); ragged M/N still handled by cdiv grids.
        tk = _TK
        kp = _round_up(dim_in, tk)
        x_p = jnp.pad(x2, ((0, 0), (0, kp - dim_in)))
        w_p = jnp.pad(w, ((0, 0), (0, kp - dim_in)))
        grid = (pl.cdiv(m, tm), pl.cdiv(dim_out, tn), kp // tk)
        out = pl.pallas_call(
            _linear_ktiled_kernel,
            out_shape=jax.ShapeDtypeStruct((m, dim_out), jnp.float32),
            grid_spec=pltpu.PrefetchScalarGridSpec(
                num_scalar_prefetch=0,
                grid=grid,
                in_specs=[
                    pl.BlockSpec((tm, tk), lambda i, j, k: (i, k)),
                    pl.BlockSpec((tn, tk), lambda i, j, k: (j, k)),
                ],
                out_specs=pl.BlockSpec((tm, tn), lambda i, j, k: (i, j)),
            ),
            compiler_params=pltpu.CompilerParams(
                dimension_semantics=("parallel", "parallel", "arbitrary"),
                vmem_limit_bytes=_vmem_limit(
                    tm * tk * 2, tn * tk * 2, tm * tn * 4),
            ),
        )(x_p, w_p)

    return out.reshape(*lead, dim_out).astype(x.dtype)


class GraphBatch:
    """Minimal stand-in for the GraphGym batch object (only node_feature)."""

    def __init__(self, node_feature):
        self.node_feature = node_feature


def linear_module_forward(batch, weight):
    """Mirrors Linear.forward: tensor -> tensor, batch -> batch (node_feature)."""
    if isinstance(batch, jnp.ndarray):
        return linear_forward(batch, weight)
    batch.node_feature = linear_forward(batch.node_feature, weight)
    return batch


if __name__ == "__main__":
    key = jax.random.PRNGKey(0)
    k_x, k_w = jax.random.split(key, 2)

    N_NODES = 256    # number of nodes in the batch
    DIM_IN = 64
    DIM_OUT = 32

    node_feature = jax.random.normal(k_x, (N_NODES, DIM_IN), dtype=jnp.float32)

    # nn.Linear(dim_in, dim_out, bias=False) weight, PyTorch layout [out, in],
    # deterministic uniform(-1/sqrt(fan_in), 1/sqrt(fan_in)) init.
    bound = 1.0 / (DIM_IN ** 0.5)
    weight = jax.random.uniform(k_w, (DIM_OUT, DIM_IN), dtype=jnp.float32,
                                minval=-bound, maxval=bound)

    # Batch-object path (node_feature), as in the GraphGym module.
    batch = GraphBatch(node_feature)
    batch = linear_module_forward(batch, weight)
    out = jax.block_until_ready(batch.node_feature)

    # Tensor path as well (same kernel).
    out_tensor = jax.block_until_ready(linear_forward(node_feature, weight))

    ref = node_feature @ weight.T
    assert out.shape == (N_NODES, DIM_OUT)
    # bf16 operands with f32 accumulation -> loosened tolerance vs. f32 ref.
    assert jnp.allclose(out, ref, atol=2e-2, rtol=2e-2)
    assert jnp.allclose(out_tensor, ref, atol=2e-2, rtol=2e-2)

    print("KERNEL_OK")
</pallas_src>

<mosaic_0001>
module attributes {stable_mosaic.version = 11 : i64} {
  func.func @_linear_fullk_kernel(%arg0: i32, %arg1: i32, %arg2: memref<128x64xbf16, #tpu.memory_space<vmem>>, %arg3: memref<32x64xbf16, #tpu.memory_space<vmem>>, %arg4: memref<128x32xf32, #tpu.memory_space<vmem>>) attributes {dimension_semantics = [#tpu.dimension_semantics<parallel>, #tpu.dimension_semantics<parallel>], iteration_bounds = array<i64: 2, 1>, scalar_prefetch = 0 : i64, scratch_operands = 0 : i64, tpu.core_type = #tpu.core_type<tc>, window_params = [{transform_indices = @transform_0, window_bounds = array<i64: 128, 64>}, {transform_indices = @transform_1, window_bounds = array<i64: 32, 64>}, {transform_indices = @transform_2, window_bounds = array<i64: 128, 32>}]} {
    %c0 = arith.constant 0 : index
    %c0_0 = arith.constant 0 : index
    %0 = vector.load %arg2[%c0, %c0_0] : memref<128x64xbf16, #tpu.memory_space<vmem>>, vector<128x64xbf16>
    %c0_1 = arith.constant 0 : index
    %c0_2 = arith.constant 0 : index
    %1 = vector.load %arg3[%c0_1, %c0_2] : memref<32x64xbf16, #tpu.memory_space<vmem>>, vector<32x64xbf16>
    %cst = arith.constant dense<0.000000e+00> : vector<128x32xf32>
    %2 = tpu.matmul %0, %1, %cst {dimension_numbers = #tpu.dot_dimension_numbers<[1], [1], [0], [0], [0, 0, 1, 0], [], []>} : vector<128x64xbf16>, vector<32x64xbf16>, vector<128x32xf32> -> vector<128x32xf32>
    %c0_3 = arith.constant 0 : index
    %c0_4 = arith.constant 0 : index
    %3 = vector.load %arg4[%c0_3, %c0_4] : memref<128x32xf32, #tpu.memory_space<vmem>>, vector<128x32xf32>
    tpu.vector_store %arg4[%c0_3, %c0_4], %2 {strides = array<i32>} : memref<128x32xf32, #tpu.memory_space<vmem>>, vector<128x32xf32>,
    return
  }
  func.func @transform_0(%arg0: i32, %arg1: i32) -> (i32, i32) {
    %c0_i32 = arith.constant 0 : i32
    %c0_i32_0 = arith.constant 0 : i32
    return %arg0, %c0_i32 : i32, i32
  }
  func.func @transform_1(%arg0: i32, %arg1: i32) -> (i32, i32) {
    %c0_i32 = arith.constant 0 : i32
    %c0_i32_0 = arith.constant 0 : i32
    return %arg1, %c0_i32 : i32, i32
  }
  func.func @transform_2(%arg0: i32, %arg1: i32) -> (i32, i32) {
    %c0_i32 = arith.constant 0 : i32
    return %arg0, %arg1 : i32, i32
  }
}

</mosaic_0001>

<bundles_post_ra>
// kernel: linear_forward.1
= control target key start
LH: loop header
LB: loop body
LE: loop exit
PB: predicated region body
PF: predicated region fallthrough
CT: control target
= control target key end

     0   :  { %s636_s9 = smov 0   ;;  %s638_s10 = smov 0   ;;  %s723_s0 = inlined_call_operand.vmem [shape: bf16[256,64], index: 0, kind: input, shape index: {}]   ;;  %s724_s1 = inlined_call_operand.vmem [shape: bf16[32,64], index: 1, kind: input, shape index: {}]   ;;  %s725_s2 = inlined_call_operand.vmem [shape: f32[256,32], index: 2, kind: output, shape index: {}]  }
   0x1   :  { %s640_s11 = smov 0  }
   0x2 LB: > { %s24_s12 = sadd.s32 1, %s615_s10  ;;  %p500_p0 = scmp.ge.s32.totalorder %s619_s11, 1  ;;  %s619_s11 = sphi %s640_s11, %s12_s11   ;;  %s615_s10 = sphi %s638_s10, %s727_s10   ;;  %s611_s9 = sphi %s636_s9, %s726_s9  }
   0x3   : > { %p26_p1 = scmp.ge.s32.totalorder %s24_s12, 2  ;;  %p138_p2 = scmp.lt.s32.totalorder %s619_s11, 3 }
   0x5   : > { %s729_s12 = smov (%p26_p1, %s24_s12), 0  ;;  %p139_p3 = pnand %p500_p0, %p138_p2 }
   0x6   : > { %s501_s17 = sshll.u32 (!%p139_p3), %s611_s9, 4 }
   0x7   : > { %142 = sbr.rel (%p139_p3) target bundleno = 237 (0xed), region = 28  ;;  %p169_p4 = scmp.lt.s32.totalorder (!%p139_p3), %s501_s17, 31 }
   0xc   : > { %v587_v0 = vld [vmem:[%s724_s1 + $0x8] sm:$0xff]   ;;  %vm260_vm0 = vcmask 523264   ;;  %v588_v1 = vld [vmem:[%s724_s1] sm:$0xff]   ;;  %s731_s17 = smov (!%p169_p4, %s501_s17), 31  ;;  %vm388_vm1 = vcmask 261120  }
   0xd   : > { %559 = vmatprep.subr.msk.bf16.mxu0 %vm260_vm0, %v587_v0  ;;  %560 = vmatprep.subr.msk.bf16.mxu1 %vm260_vm0, %v587_v0  ;;  %v289_v2 = vsel %vm260_vm0, %v587_v0, 0  ;;  %s502_s18 = sshll.u32 %s731_s17, 2  ;;  %v286_v3 = vsel %vm260_vm0, %v588_v1, 0  ;;  %s504_s22 = sshll.u32 %s731_s17, 3 }
   0xe   : > { %536 = vmatpush3.bf16.xpose.msra.mxu0 %v289_v2  ;;  %557 = vmatpush3.bf16.xpose.msra.mxu1 %v289_v2  ;;  %s172_s21 = scalar_lea.vmem %s723_s0, %s502_s18  ;;  %s680_s25 = scalar_lea.vmem %s725_s2, %s504_s22 }
   0xf   : > { %561 = vmatprep.subr.msk.bf16.mxu0 %vm260_vm0, %v588_v1  ;;  %562 = vmatprep.subr.msk.bf16.mxu1 %vm260_vm0, %v588_v1  ;;  %v589_v4 = vld [vmem:[%s172_s21] sm:$0xff]   ;;  %v591_v6 = vld [vmem:[%s172_s21 + $0x8] sm:$0xff]   ;;  %v593_v8 = vld [vmem:[%s172_s21 + $0x10] sm:$0xff]  }
  0x10   : > { %v590_v5 = vld [vmem:[%s172_s21 + $0x20] sm:$0xff]   ;;  %539 = vmatprep.mubr.msk.bf16.mxu0 %vm260_vm0, %v589_v4  ;;  %v592_v7 = vld [vmem:[%s172_s21 + $0x28] sm:$0xff]   ;;  %v594_v9 = vld [vmem:[%s172_s21 + $0x30] sm:$0xff]  }
  0x11   : > { %547 = vmatprep.mubr.msk.bf16.mxu1 %vm260_vm0, %v590_v5  ;;  %v595_v10 = vld [vmem:[%s172_s21 + $0x18] sm:$0xff]  }
  0x12   : > { %v596_v11 = vld [vmem:[%s172_s21 + $0x38] sm:$0xff]  }
  0x16   : > { %538 = vmatpush3.bf16.xpose.msra.mxu0 %v286_v3  ;;  %558 = vmatpush3.bf16.xpose.msra.mxu1 %v286_v3 }
  0x1d   : > { %540 = vmatmul.mubr.msk.bf16.vlgmr.msra.gmra.mxu0 %vm260_vm0, %v591_v6  ;;  %548 = vmatmul.mubr.msk.bf16.vlgmr.msra.gmra.mxu1 %vm260_vm0, %v592_v7 }
  0x1e   : > { %543 = vmatprep.mubr.msk.bf16.mxu0 %vm260_vm0, %v593_v8  ;;  %551 = vmatprep.mubr.msk.bf16.mxu1 %vm260_vm0, %v594_v9 }
  0x25   : > { %544 = vmatmul.mubr.msk.bf16.gmra.mxu0 %vm260_vm0, %v595_v10  ;;  %552 = vmatmul.mubr.msk.bf16.gmra.mxu1 %vm260_vm0, %v596_v11 }
  0xdd   : > { %v541_v12 = vpop.f32.mrf.mxu0  ;;  %v549_v13 = vpop.f32.mrf.mxu1 }
  0xde   : > { %391 = vst.msk [vmem:[%s680_s25 + $0x10] sm:$0xff] %vm388_vm1, %v541_v12  ;;  %399 = vst.msk [vmem:[%s680_s25 + $0x50] sm:$0xff] %vm388_vm1, %v549_v13 }
  0xdf   : > { %v325_v14 = vpop.f32.mrf.mxu0  ;;  %v357_v15 = vpop.f32.mrf.mxu1 }
  0xe0   : > { %389 = vst.msk [vmem:[%s680_s25] sm:$0xff] %vm388_vm1, %v325_v14  ;;  %397 = vst.msk [vmem:[%s680_s25 + $0x40] sm:$0xff] %vm388_vm1, %v357_v15 }
  0xe1   : > { %v542_v16 = vpop.f32.mrf.mxu0  ;;  %v550_v17 = vpop.f32.mrf.mxu1 }
  0xe2   : > { %392 = vst.msk [vmem:[%s680_s25 + $0x18] sm:$0xff] %vm388_vm1, %v542_v16  ;;  %400 = vst.msk [vmem:[%s680_s25 + $0x58] sm:$0xff] %vm388_vm1, %v550_v17 }
  0xe3   : > { %v328_v18 = vpop.f32.mrf.mxu0  ;;  %v360_v19 = vpop.f32.mrf.mxu1 }
  0xe4   : > { %390 = vst.msk [vmem:[%s680_s25 + $0x8] sm:$0xff] %vm388_vm1, %v328_v18  ;;  %398 = vst.msk [vmem:[%s680_s25 + $0x48] sm:$0xff] %vm388_vm1, %v360_v19 }
  0xe5   : > { %v545_v20 = vpop.f32.mrf.mxu0  ;;  %v553_v21 = vpop.f32.mrf.mxu1 }
  0xe6   : > { %395 = vst.msk [vmem:[%s680_s25 + $0x30] sm:$0xff] %vm388_vm1, %v545_v20  ;;  %403 = vst.msk [vmem:[%s680_s25 + $0x70] sm:$0xff] %vm388_vm1, %v553_v21 }
  0xe7   : > { %v341_v22 = vpop.f32.mrf.mxu0  ;;  %v373_v23 = vpop.f32.mrf.mxu1 }
  0xe8   : > { %393 = vst.msk [vmem:[%s680_s25 + $0x20] sm:$0xff] %vm388_vm1, %v341_v22  ;;  %401 = vst.msk [vmem:[%s680_s25 + $0x60] sm:$0xff] %vm388_vm1, %v373_v23 }
  0xe9   : > { %v546_v24 = vpop.f32.mrf.mxu0  ;;  %v554_v25 = vpop.f32.mrf.mxu1 }
  0xea   : > { %396 = vst.msk [vmem:[%s680_s25 + $0x38] sm:$0xff] %vm388_vm1, %v546_v24  ;;  %404 = vst.msk [vmem:[%s680_s25 + $0x78] sm:$0xff] %vm388_vm1, %v554_v25 }
  0xeb   : > { %v344_v26 = vpop.f32.mrf.mxu0  ;;  %v376_v27 = vpop.f32.mrf.mxu1 }
  0xec   : > { %394 = vst.msk [vmem:[%s680_s25 + $0x28] sm:$0xff] %vm388_vm1, %v344_v26  ;;  %402 = vst.msk [vmem:[%s680_s25 + $0x68] sm:$0xff] %vm388_vm1, %v376_v27 }
  0xed PF: > { %s12_s11 = sadd.s32 1, %s619_s11   ;;  %s726_s9 = smov %s615_s10 }
  0xee   : > { %p9_p5 = scmp.ge.s32.totalorder %s12_s11, 4   ;;  %s727_s10 = smov %s729_s12 }
  0xf0   :  { %11 = sbr.rel (!%p9_p5) target bundleno = 2 (0x2), region = 61 }

</bundles_post_ra>
